<compile_context>
chip_gen: v7x
topology: tpu7x:2x2x1
jax: 0.10.0
libtpu: 0.0.40
codegen_flags: <defaults>
</compile_context>

<pallas_src>
import math

import jax
import jax.numpy as jnp
from jax.experimental import pallas as pl
from jax.experimental.pallas import tpu as pltpu


def make_mha_kernel(n_heads: int, d_k: int, d_v: int):
    neg_big = -1000000000.0  # matches torch masked_fill_ value

    def mha_kernel(q_ref, k_ref, v_ref, mask_ref,
                   wq_ref, bq_ref, wk_ref, bk_ref, wv_ref, bv_ref,
                   wo_ref, bo_ref, out_ref):
        x_q = q_ref[...]          # (tq, d_model)
        x_k = k_ref[...]          # (S,  d_model)
        x_v = v_ref[...]          # (S,  d_model)

        # ---- QKV projections: three lane-dense MXU matmuls, contraction over
        # d_model, full-width N = H*d_k / H*d_v.  1/sqrt(d_k) already folded
        # into wq/bq by the wrapper. ----
        q2 = jnp.dot(x_q, wq_ref[...], preferred_element_type=jnp.float32) + bq_ref[...]
        k2 = jnp.dot(x_k, wk_ref[...], preferred_element_type=jnp.float32) + bk_ref[...]
        v2 = jnp.dot(x_v, wv_ref[...], preferred_element_type=jnp.float32) + bv_ref[...]

        # ---- One-time head split (pure layout shuffle, no per-head matmuls).
        # All subsequent math is head-batched. ----
        qh = jnp.stack([q2[:, h * d_k:(h + 1) * d_k] for h in range(n_heads)], axis=0)
        kh = jnp.stack([k2[:, h * d_k:(h + 1) * d_k] for h in range(n_heads)], axis=0)
        vh = jnp.stack([v2[:, h * d_v:(h + 1) * d_v] for h in range(n_heads)], axis=0)
        # qh: (H, tq, d_k)   kh: (H, S, d_k)   vh: (H, S, d_v)

        # ---- Head-batched scores; contraction on the last dims (no .T). ----
        scores = jnp.einsum('hqk,hsk->hqs', qh, kh,
                            preferred_element_type=jnp.float32)        # (H, tq, S)

        # ---- Additive mask, computed once and broadcast over heads. ----
        add_mask = mask_ref[...] * neg_big                              # (tq, S)
        scores = scores + add_mask[None, :, :]

        # ---- Softmax with max-subtraction; divide goes to the EUP. ----
        m = jnp.max(scores, axis=-1, keepdims=True)
        e = jnp.exp(scores - m)
        denom = jnp.sum(e, axis=-1, keepdims=True)
        attn = e * pl.reciprocal(denom, approx=True)

        # ---- Head-batched context. ----
        ctx = jnp.einsum('hqs,hsv->hqv', attn, vh,
                         preferred_element_type=jnp.float32)            # (H, tq, d_v)

        # ---- Merge heads (layout only) and do ONE output projection with
        # contraction K = n_heads*d_v, plus residual and bias. ----
        ctx2 = jnp.concatenate([ctx[h] for h in range(n_heads)], axis=-1)  # (tq, H*d_v)
        out = jnp.dot(ctx2, wo_ref[...], preferred_element_type=jnp.float32)

        out_ref[...] = (x_q + bo_ref[...] + out).astype(out_ref.dtype)

    return mha_kernel


def multi_head_attention(Q, K, V, attn_mask, params,
                         *, n_heads: int, d_k: int, d_v: int):
    """Q, K, V: [B, S, d_model] f32; attn_mask: [B, S, S] (1.0 / True = masked)."""
    B, S, d_model = Q.shape
    wq, bq, wk, bk, wv, bv, wo, bo = params   # weights pre-transposed, biases (1, N)

    # Fold the 1/sqrt(d_k) scale into the Q projection (one-time weight prep).
    scale = 1.0 / math.sqrt(d_k)
    wq_s = wq * scale
    bq_s = bq * scale

    attn_mask = attn_mask.astype(jnp.float32)

    # Query tiling: second (parallel) grid axis.  tq must be a multiple of 8
    # that divides S, or the full S.
    tq = 128 if (S % 128 == 0) else S
    n_qt = S // tq

    kernel = make_mha_kernel(n_heads, d_k, d_v)

    q_spec = pl.BlockSpec((None, tq, d_model), lambda b, qi: (b, qi, 0))
    kv_spec = pl.BlockSpec((None, S, d_model), lambda b, qi: (b, 0, 0))
    mask_spec = pl.BlockSpec((None, tq, S), lambda b, qi: (b, qi, 0))

    def full_spec(arr):
        return pl.BlockSpec(arr.shape, lambda b, qi, _nd=arr.ndim: (0,) * _nd)

    grid_spec = pltpu.PrefetchScalarGridSpec(
        num_scalar_prefetch=0,
        grid=(B, n_qt),
        in_specs=[
            q_spec, kv_spec, kv_spec, mask_spec,
            full_spec(wq_s), full_spec(bq_s),
            full_spec(wk), full_spec(bk),
            full_spec(wv), full_spec(bv),
            full_spec(wo), full_spec(bo),
        ],
        out_specs=q_spec,
    )

    return pl.pallas_call(
        kernel,
        out_shape=jax.ShapeDtypeStruct((B, S, d_model), jnp.float32),
        grid_spec=grid_spec,
        compiler_params=pltpu.CompilerParams(
            dimension_semantics=("parallel", "parallel"),
            # Explicit limit: safe on all generations (v5e default is only 16 MiB;
            # v7x has 64 MiB physical VMEM, so don't let blocks balloon).
            vmem_limit_bytes=32 * 1024 * 1024),
    )(Q, K, V, attn_mask, wq_s, bq_s, wk, bk, wv, bv, wo, bo)


def reference_mha(Q, K, V, attn_mask, params, *, n_heads, d_k, d_v):
    """Plain-JAX reference mirroring the PyTorch forward."""
    wq, bq, wk, bk, wv, bv, wo, bo = params
    B, S, d_model = Q.shape
    q = (Q @ wq + bq).reshape(B, S, n_heads, d_k).transpose(0, 2, 1, 3)
    k = (K @ wk + bk).reshape(B, S, n_heads, d_k).transpose(0, 2, 1, 3)
    v = (V @ wv + bv).reshape(B, S, n_heads, d_v).transpose(0, 2, 1, 3)
    scores = jnp.einsum("bhqd,bhkd->bhqk", q, k) / math.sqrt(d_k)
    mask = attn_mask[:, None, :, :] > 0.5
    scores = jnp.where(mask, -1000000000.0, scores)
    attn = jax.nn.softmax(scores, axis=-1)
    ctx = jnp.einsum("bhqk,bhkd->bhqd", attn, v)
    ctx = ctx.transpose(0, 2, 1, 3).reshape(B, S, n_heads * d_v)
    return ctx @ wo + bo + Q


if __name__ == "__main__":
    # Small config consistent with the module.
    B, S = 2, 8
    d_model, d_k, d_v, n_heads = 32, 8, 8, 4

    key = jax.random.PRNGKey(0)
    keys = jax.random.split(key, 12)

    # Deterministic parameter init (synthetic; not a checkpoint load).
    def init_w(k, fan_in, fan_out):
        bound = 1.0 / math.sqrt(fan_in)
        return jax.random.uniform(k, (fan_in, fan_out), jnp.float32, -bound, bound)

    def init_b(k, fan_in, fan_out):
        bound = 1.0 / math.sqrt(fan_in)
        return jax.random.uniform(k, (1, fan_out), jnp.float32, -bound, bound)

    wq = init_w(keys[0], d_model, n_heads * d_k)
    bq = init_b(keys[1], d_model, n_heads * d_k)
    wk = init_w(keys[2], d_model, n_heads * d_k)
    bk = init_b(keys[3], d_model, n_heads * d_k)
    wv = init_w(keys[4], d_model, n_heads * d_v)
    bv = init_b(keys[5], d_model, n_heads * d_v)
    wo = init_w(keys[6], n_heads * d_v, d_model)
    bo = init_b(keys[7], n_heads * d_v, d_model)
    params = (wq, bq, wk, bk, wv, bv, wo, bo)

    Q = jax.random.normal(keys[8], (B, S, d_model), jnp.float32)
    K = jax.random.normal(keys[9], (B, S, d_model), jnp.float32)
    V = jax.random.normal(keys[10], (B, S, d_model), jnp.float32)

    # Causal-style mask (1.0 = masked), broadcast over batch.
    causal = jnp.triu(jnp.ones((S, S), jnp.float32), k=1)
    attn_mask = jnp.broadcast_to(causal, (B, S, S))

    out = multi_head_attention(Q, K, V, attn_mask, params,
                               n_heads=n_heads, d_k=d_k, d_v=d_v)
    out = jax.block_until_ready(out)

    ref = reference_mha(Q, K, V, attn_mask, params,
                        n_heads=n_heads, d_k=d_k, d_v=d_v)
    # Tolerance slightly loosened vs. the previous version because the softmax
    # denominator uses the EUP approximate reciprocal.
    assert jnp.allclose(out, ref, atol=2e-3, rtol=2e-3), "mismatch vs reference"

    print("KERNEL_OK")
</pallas_src>

<mosaic_0001>
module attributes {stable_mosaic.version = 11 : i64} {
  func.func @mha_kernel(%arg0: i32, %arg1: i32, %arg2: memref<1x8x32xf32, #tpu.memory_space<vmem>>, %arg3: memref<1x8x32xf32, #tpu.memory_space<vmem>>, %arg4: memref<1x8x32xf32, #tpu.memory_space<vmem>>, %arg5: memref<1x8x8xf32, #tpu.memory_space<vmem>>, %arg6: memref<32x32xf32, #tpu.memory_space<vmem>>, %arg7: memref<1x32xf32, #tpu.memory_space<vmem>>, %arg8: memref<32x32xf32, #tpu.memory_space<vmem>>, %arg9: memref<1x32xf32, #tpu.memory_space<vmem>>, %arg10: memref<32x32xf32, #tpu.memory_space<vmem>>, %arg11: memref<1x32xf32, #tpu.memory_space<vmem>>, %arg12: memref<32x32xf32, #tpu.memory_space<vmem>>, %arg13: memref<1x32xf32, #tpu.memory_space<vmem>>, %arg14: memref<1x8x32xf32, #tpu.memory_space<vmem>>) attributes {dimension_semantics = [#tpu.dimension_semantics<parallel>, #tpu.dimension_semantics<parallel>], iteration_bounds = array<i64: 2, 1>, scalar_prefetch = 0 : i64, scratch_operands = 0 : i64, tpu.core_type = #tpu.core_type<tc>, window_params = [{transform_indices = @transform_0, window_bounds = array<i64: 1, 8, 32>}, {transform_indices = @transform_1, window_bounds = array<i64: 1, 8, 32>}, {transform_indices = @transform_2, window_bounds = array<i64: 1, 8, 32>}, {transform_indices = @transform_3, window_bounds = array<i64: 1, 8, 8>}, {pipeline_mode = #tpu.pipeline_mode<synchronous>, transform_indices = @transform_4, window_bounds = array<i64: 32, 32>}, {pipeline_mode = #tpu.pipeline_mode<synchronous>, transform_indices = @transform_5, window_bounds = array<i64: 1, 32>}, {pipeline_mode = #tpu.pipeline_mode<synchronous>, transform_indices = @transform_6, window_bounds = array<i64: 32, 32>}, {pipeline_mode = #tpu.pipeline_mode<synchronous>, transform_indices = @transform_7, window_bounds = array<i64: 1, 32>}, {pipeline_mode = #tpu.pipeline_mode<synchronous>, transform_indices = @transform_8, window_bounds = array<i64: 32, 32>}, {pipeline_mode = #tpu.pipeline_mode<synchronous>, transform_indices = @transform_9, window_bounds = array<i64: 1, 32>}, {pipeline_mode = #tpu.pipeline_mode<synchronous>, transform_indices = @transform_10, window_bounds = array<i64: 32, 32>}, {pipeline_mode = #tpu.pipeline_mode<synchronous>, transform_indices = @transform_11, window_bounds = array<i64: 1, 32>}, {transform_indices = @transform_12, window_bounds = array<i64: 1, 8, 32>}]} {
    %c0 = arith.constant 0 : index
    %c0_0 = arith.constant 0 : index
    %c0_1 = arith.constant 0 : index
    %0 = vector.load %arg2[%c0, %c0_0, %c0_1] : memref<1x8x32xf32, #tpu.memory_space<vmem>>, vector<1x8x32xf32>
    %1 = vector.shape_cast %0 : vector<1x8x32xf32> to vector<8x32xf32>
    %c0_2 = arith.constant 0 : index
    %c0_3 = arith.constant 0 : index
    %c0_4 = arith.constant 0 : index
    %2 = vector.load %arg3[%c0_2, %c0_3, %c0_4] : memref<1x8x32xf32, #tpu.memory_space<vmem>>, vector<1x8x32xf32>
    %3 = vector.shape_cast %2 : vector<1x8x32xf32> to vector<8x32xf32>
    %c0_5 = arith.constant 0 : index
    %c0_6 = arith.constant 0 : index
    %c0_7 = arith.constant 0 : index
    %4 = vector.load %arg4[%c0_5, %c0_6, %c0_7] : memref<1x8x32xf32, #tpu.memory_space<vmem>>, vector<1x8x32xf32>
    %5 = vector.shape_cast %4 : vector<1x8x32xf32> to vector<8x32xf32>
    %c0_8 = arith.constant 0 : index
    %c0_9 = arith.constant 0 : index
    %6 = vector.load %arg6[%c0_8, %c0_9] : memref<32x32xf32, #tpu.memory_space<vmem>>, vector<32x32xf32>
    %cst = arith.constant dense<0.000000e+00> : vector<8x32xf32>
    %7 = tpu.matmul %1, %6, %cst {dimension_numbers = #tpu.dot_dimension_numbers<[1], [0], [0], [1], [0, 0, 1, 1], [], []>} : vector<8x32xf32>, vector<32x32xf32>, vector<8x32xf32> -> vector<8x32xf32>
    %c0_10 = arith.constant 0 : index
    %c0_11 = arith.constant 0 : index
    %8 = vector.load %arg7[%c0_10, %c0_11] : memref<1x32xf32, #tpu.memory_space<vmem>>, vector<1x32xf32>
    %9 = vector.broadcast %8 : vector<1x32xf32> to vector<8x32xf32>
    %10 = arith.addf %7, %9 : vector<8x32xf32>
    %c0_12 = arith.constant 0 : index
    %c0_13 = arith.constant 0 : index
    %11 = vector.load %arg8[%c0_12, %c0_13] : memref<32x32xf32, #tpu.memory_space<vmem>>, vector<32x32xf32>
    %cst_14 = arith.constant dense<0.000000e+00> : vector<8x32xf32>
    %12 = tpu.matmul %3, %11, %cst_14 {dimension_numbers = #tpu.dot_dimension_numbers<[1], [0], [0], [1], [0, 0, 1, 1], [], []>} : vector<8x32xf32>, vector<32x32xf32>, vector<8x32xf32> -> vector<8x32xf32>
    %c0_15 = arith.constant 0 : index
    %c0_16 = arith.constant 0 : index
    %13 = vector.load %arg9[%c0_15, %c0_16] : memref<1x32xf32, #tpu.memory_space<vmem>>, vector<1x32xf32>
    %14 = vector.broadcast %13 : vector<1x32xf32> to vector<8x32xf32>
    %15 = arith.addf %12, %14 : vector<8x32xf32>
    %c0_17 = arith.constant 0 : index
    %c0_18 = arith.constant 0 : index
    %16 = vector.load %arg10[%c0_17, %c0_18] : memref<32x32xf32, #tpu.memory_space<vmem>>, vector<32x32xf32>
    %cst_19 = arith.constant dense<0.000000e+00> : vector<8x32xf32>
    %17 = tpu.matmul %5, %16, %cst_19 {dimension_numbers = #tpu.dot_dimension_numbers<[1], [0], [0], [1], [0, 0, 1, 1], [], []>} : vector<8x32xf32>, vector<32x32xf32>, vector<8x32xf32> -> vector<8x32xf32>
    %c0_20 = arith.constant 0 : index
    %c0_21 = arith.constant 0 : index
    %18 = vector.load %arg11[%c0_20, %c0_21] : memref<1x32xf32, #tpu.memory_space<vmem>>, vector<1x32xf32>
    %19 = vector.broadcast %18 : vector<1x32xf32> to vector<8x32xf32>
    %20 = arith.addf %17, %19 : vector<8x32xf32>
    %21 = vector.extract_strided_slice %10 {offsets = [0, 0], sizes = [8, 8], strides = [1, 1]} : vector<8x32xf32> to vector<8x8xf32>
    %22 = vector.extract_strided_slice %10 {offsets = [0, 8], sizes = [8, 8], strides = [1, 1]} : vector<8x32xf32> to vector<8x8xf32>
    %23 = vector.extract_strided_slice %10 {offsets = [0, 16], sizes = [8, 8], strides = [1, 1]} : vector<8x32xf32> to vector<8x8xf32>
    %24 = vector.extract_strided_slice %10 {offsets = [0, 24], sizes = [8, 8], strides = [1, 1]} : vector<8x32xf32> to vector<8x8xf32>
    %25 = vector.shape_cast %21 : vector<8x8xf32> to vector<1x8x8xf32>
    %26 = vector.shape_cast %22 : vector<8x8xf32> to vector<1x8x8xf32>
    %27 = vector.shape_cast %23 : vector<8x8xf32> to vector<1x8x8xf32>
    %28 = vector.shape_cast %24 : vector<8x8xf32> to vector<1x8x8xf32>
    %29 = tpu.concatenate %25, %26, %27, %28 in 0 : vector<1x8x8xf32>, vector<1x8x8xf32>, vector<1x8x8xf32>, vector<1x8x8xf32> -> vector<4x8x8xf32>
    %30 = vector.extract_strided_slice %15 {offsets = [0, 0], sizes = [8, 8], strides = [1, 1]} : vector<8x32xf32> to vector<8x8xf32>
    %31 = vector.extract_strided_slice %15 {offsets = [0, 8], sizes = [8, 8], strides = [1, 1]} : vector<8x32xf32> to vector<8x8xf32>
    %32 = vector.extract_strided_slice %15 {offsets = [0, 16], sizes = [8, 8], strides = [1, 1]} : vector<8x32xf32> to vector<8x8xf32>
    %33 = vector.extract_strided_slice %15 {offsets = [0, 24], sizes = [8, 8], strides = [1, 1]} : vector<8x32xf32> to vector<8x8xf32>
    %34 = vector.shape_cast %30 : vector<8x8xf32> to vector<1x8x8xf32>
    %35 = vector.shape_cast %31 : vector<8x8xf32> to vector<1x8x8xf32>
    %36 = vector.shape_cast %32 : vector<8x8xf32> to vector<1x8x8xf32>
    %37 = vector.shape_cast %33 : vector<8x8xf32> to vector<1x8x8xf32>
    %38 = tpu.concatenate %34, %35, %36, %37 in 0 : vector<1x8x8xf32>, vector<1x8x8xf32>, vector<1x8x8xf32>, vector<1x8x8xf32> -> vector<4x8x8xf32>
    %39 = vector.extract_strided_slice %20 {offsets = [0, 0], sizes = [8, 8], strides = [1, 1]} : vector<8x32xf32> to vector<8x8xf32>
    %40 = vector.extract_strided_slice %20 {offsets = [0, 8], sizes = [8, 8], strides = [1, 1]} : vector<8x32xf32> to vector<8x8xf32>
    %41 = vector.extract_strided_slice %20 {offsets = [0, 16], sizes = [8, 8], strides = [1, 1]} : vector<8x32xf32> to vector<8x8xf32>
    %42 = vector.extract_strided_slice %20 {offsets = [0, 24], sizes = [8, 8], strides = [1, 1]} : vector<8x32xf32> to vector<8x8xf32>
    %43 = vector.shape_cast %39 : vector<8x8xf32> to vector<1x8x8xf32>
    %44 = vector.shape_cast %40 : vector<8x8xf32> to vector<1x8x8xf32>
    %45 = vector.shape_cast %41 : vector<8x8xf32> to vector<1x8x8xf32>
    %46 = vector.shape_cast %42 : vector<8x8xf32> to vector<1x8x8xf32>
    %47 = tpu.concatenate %43, %44, %45, %46 in 0 : vector<1x8x8xf32>, vector<1x8x8xf32>, vector<1x8x8xf32>, vector<1x8x8xf32> -> vector<4x8x8xf32>
    "tpu.trace_start"() <{level = 10 : i32, message = "hqk,hsk->hqs"}> : () -> ()
    %cst_22 = arith.constant dense<0.000000e+00> : vector<4x8x8xf32>
    %48 = tpu.matmul %29, %38, %cst_22 {dimension_numbers = #tpu.dot_dimension_numbers<[2], [2], [1], [1], [0, 0, 0, 1, 1, 1], [0], [0]>} : vector<4x8x8xf32>, vector<4x8x8xf32>, vector<4x8x8xf32> -> vector<4x8x8xf32>
    "tpu.trace_stop"() : () -> ()
    %c0_23 = arith.constant 0 : index
    %c0_24 = arith.constant 0 : index
    %c0_25 = arith.constant 0 : index
    %49 = vector.load %arg5[%c0_23, %c0_24, %c0_25] : memref<1x8x8xf32, #tpu.memory_space<vmem>>, vector<1x8x8xf32>
    %50 = vector.shape_cast %49 : vector<1x8x8xf32> to vector<8x8xf32>
    %cst_26 = arith.constant -1.000000e+09 : f32
    %51 = vector.broadcast %cst_26 : f32 to vector<8x8xf32>
    %52 = arith.mulf %50, %51 : vector<8x8xf32>
    %53 = vector.shape_cast %52 : vector<8x8xf32> to vector<1x8x8xf32>
    %54 = vector.broadcast %53 : vector<1x8x8xf32> to vector<4x8x8xf32>
    %55 = arith.addf %48, %54 : vector<4x8x8xf32>
    %cst_27 = arith.constant dense<0xFF800000> : vector<4x8xf32>
    %56 = vector.multi_reduction <maximumf>, %55, %cst_27 [2] : vector<4x8x8xf32> to vector<4x8xf32>
    %57 = vector.shape_cast %56 : vector<4x8xf32> to vector<4x8x1xf32>
    %58 = vector.broadcast %57 : vector<4x8x1xf32> to vector<4x8x8xf32>
    %59 = arith.subf %55, %58 : vector<4x8x8xf32>
    %60 = math.exp %59 : vector<4x8x8xf32>
    %cst_28 = arith.constant dense<0.000000e+00> : vector<4x8xf32>
    %61 = vector.multi_reduction <add>, %60, %cst_28 [2] : vector<4x8x8xf32> to vector<4x8xf32>
    %62 = vector.shape_cast %61 : vector<4x8xf32> to vector<4x8x1xf32>
    %63 = tpu.reciprocal %62 {approx = true} : vector<4x8x1xf32> -> vector<4x8x1xf32>
    %64 = vector.broadcast %63 : vector<4x8x1xf32> to vector<4x8x8xf32>
    %65 = arith.mulf %60, %64 : vector<4x8x8xf32>
    "tpu.trace_start"() <{level = 10 : i32, message = "hqs,hsv->hqv"}> : () -> ()
    %cst_29 = arith.constant dense<0.000000e+00> : vector<4x8x8xf32>
    %66 = tpu.matmul %65, %47, %cst_29 {dimension_numbers = #tpu.dot_dimension_numbers<[2], [1], [1], [2], [0, 0, 0, 1, 1, 2], [0], [0]>} : vector<4x8x8xf32>, vector<4x8x8xf32>, vector<4x8x8xf32> -> vector<4x8x8xf32>
    "tpu.trace_stop"() : () -> ()
    %67 = vector.extract_strided_slice %66 {offsets = [0, 0, 0], sizes = [1, 8, 8], strides = [1, 1, 1]} : vector<4x8x8xf32> to vector<1x8x8xf32>
    %68 = vector.shape_cast %67 : vector<1x8x8xf32> to vector<8x8xf32>
    %69 = vector.extract_strided_slice %66 {offsets = [1, 0, 0], sizes = [1, 8, 8], strides = [1, 1, 1]} : vector<4x8x8xf32> to vector<1x8x8xf32>
    %70 = vector.shape_cast %69 : vector<1x8x8xf32> to vector<8x8xf32>
    %71 = vector.extract_strided_slice %66 {offsets = [2, 0, 0], sizes = [1, 8, 8], strides = [1, 1, 1]} : vector<4x8x8xf32> to vector<1x8x8xf32>
    %72 = vector.shape_cast %71 : vector<1x8x8xf32> to vector<8x8xf32>
    %73 = vector.extract_strided_slice %66 {offsets = [3, 0, 0], sizes = [1, 8, 8], strides = [1, 1, 1]} : vector<4x8x8xf32> to vector<1x8x8xf32>
    %74 = vector.shape_cast %73 : vector<1x8x8xf32> to vector<8x8xf32>
    %75 = tpu.concatenate %68, %70, %72, %74 in 1 : vector<8x8xf32>, vector<8x8xf32>, vector<8x8xf32>, vector<8x8xf32> -> vector<8x32xf32>
    %c0_30 = arith.constant 0 : index
    %c0_31 = arith.constant 0 : index
    %76 = vector.load %arg12[%c0_30, %c0_31] : memref<32x32xf32, #tpu.memory_space<vmem>>, vector<32x32xf32>
    %cst_32 = arith.constant dense<0.000000e+00> : vector<8x32xf32>
    %77 = tpu.matmul %75, %76, %cst_32 {dimension_numbers = #tpu.dot_dimension_numbers<[1], [0], [0], [1], [0, 0, 1, 1], [], []>} : vector<8x32xf32>, vector<32x32xf32>, vector<8x32xf32> -> vector<8x32xf32>
    %c0_33 = arith.constant 0 : index
    %c0_34 = arith.constant 0 : index
    %78 = vector.load %arg13[%c0_33, %c0_34] : memref<1x32xf32, #tpu.memory_space<vmem>>, vector<1x32xf32>
    %79 = vector.broadcast %78 : vector<1x32xf32> to vector<8x32xf32>
    %80 = arith.addf %1, %79 : vector<8x32xf32>
    %81 = arith.addf %80, %77 : vector<8x32xf32>
    %c0_35 = arith.constant 0 : index
    %c0_36 = arith.constant 0 : index
    %c0_37 = arith.constant 0 : index
    %82 = vector.load %arg14[%c0_35, %c0_36, %c0_37] : memref<1x8x32xf32, #tpu.memory_space<vmem>>, vector<1x8x32xf32>
    %83 = vector.shape_cast %82 : vector<1x8x32xf32> to vector<8x32xf32>
    %84 = vector.shape_cast %81 : vector<8x32xf32> to vector<1x8x32xf32>
    tpu.vector_store %arg14[%c0_35, %c0_36, %c0_37], %84 {strides = array<i32>} : memref<1x8x32xf32, #tpu.memory_space<vmem>>, vector<1x8x32xf32>,
    return
  }
  func.func @transform_0(%arg0: i32, %arg1: i32) -> (i32, i32, i32) {
    %c0_i32 = arith.constant 0 : i32
    %c0_i32_0 = arith.constant 0 : i32
    return %arg0, %arg1, %c0_i32 : i32, i32, i32
  }
  func.func @transform_1(%arg0: i32, %arg1: i32) -> (i32, i32, i32) {
    %c0_i32 = arith.constant 0 : i32
    %c0_i32_0 = arith.constant 0 : i32
    %c0_i32_1 = arith.constant 0 : i32
    return %arg0, %c0_i32, %c0_i32_0 : i32, i32, i32
  }
  func.func @transform_2(%arg0: i32, %arg1: i32) -> (i32, i32, i32) {
    %c0_i32 = arith.constant 0 : i32
    %c0_i32_0 = arith.constant 0 : i32
    %c0_i32_1 = arith.constant 0 : i32
    return %arg0, %c0_i32, %c0_i32_0 : i32, i32, i32
  }
  func.func @transform_3(%arg0: i32, %arg1: i32) -> (i32, i32, i32) {
    %c0_i32 = arith.constant 0 : i32
    %c0_i32_0 = arith.constant 0 : i32
    return %arg0, %arg1, %c0_i32 : i32, i32, i32
  }
  func.func @transform_4(%arg0: i32, %arg1: i32) -> (i32, i32) {
    %c0_i32 = arith.constant 0 : i32
    %c0_i32_0 = arith.constant 0 : i32
    %c0_i32_1 = arith.constant 0 : i32
    return %c0_i32, %c0_i32_0 : i32, i32
  }
  func.func @transform_5(%arg0: i32, %arg1: i32) -> (i32, i32) {
    %c0_i32 = arith.constant 0 : i32
    %c0_i32_0 = arith.constant 0 : i32
    %c0_i32_1 = arith.constant 0 : i32
    return %c0_i32, %c0_i32_0 : i32, i32
  }
  func.func @transform_6(%arg0: i32, %arg1: i32) -> (i32, i32) {
    %c0_i32 = arith.constant 0 : i32
    %c0_i32_0 = arith.constant 0 : i32
    %c0_i32_1 = arith.constant 0 : i32
    return %c0_i32, %c0_i32_0 : i32, i32
  }
  func.func @transform_7(%arg0: i32, %arg1: i32) -> (i32, i32) {
    %c0_i32 = arith.constant 0 : i32
    %c0_i32_0 = arith.constant 0 : i32
    %c0_i32_1 = arith.constant 0 : i32
    return %c0_i32, %c0_i32_0 : i32, i32
  }
  func.func @transform_8(%arg0: i32, %arg1: i32) -> (i32, i32) {
    %c0_i32 = arith.constant 0 : i32
    %c0_i32_0 = arith.constant 0 : i32
    %c0_i32_1 = arith.constant 0 : i32
    return %c0_i32, %c0_i32_0 : i32, i32
  }
  func.func @transform_9(%arg0: i32, %arg1: i32) -> (i32, i32) {
    %c0_i32 = arith.constant 0 : i32
    %c0_i32_0 = arith.constant 0 : i32
    %c0_i32_1 = arith.constant 0 : i32
    return %c0_i32, %c0_i32_0 : i32, i32
  }
  func.func @transform_10(%arg0: i32, %arg1: i32) -> (i32, i32) {
    %c0_i32 = arith.constant 0 : i32
    %c0_i32_0 = arith.constant 0 : i32
    %c0_i32_1 = arith.constant 0 : i32
    return %c0_i32, %c0_i32_0 : i32, i32
  }
  func.func @transform_11(%arg0: i32, %arg1: i32) -> (i32, i32) {
    %c0_i32 = arith.constant 0 : i32
    %c0_i32_0 = arith.constant 0 : i32
    %c0_i32_1 = arith.constant 0 : i32
    return %c0_i32, %c0_i32_0 : i32, i32
  }
  func.func @transform_12(%arg0: i32, %arg1: i32) -> (i32, i32, i32) {
    %c0_i32 = arith.constant 0 : i32
    %c0_i32_0 = arith.constant 0 : i32
    return %arg0, %arg1, %c0_i32 : i32, i32, i32
  }
}

</mosaic_0001>

<bundles_post_ra>
// kernel: tpu_custom_call.1
= control target key start
LH: loop header
LB: loop body
LE: loop exit
PB: predicated region body
PF: predicated region fallthrough
CT: control target
= control target key end

     0   :  { %s3025_s0 = inlined_call_operand.hbm [shape: f32[2,8,32], index: 0, kind: input, shape index: {}]   ;;  %s3026_s1 = inlined_call_operand.hbm [shape: f32[2,8,32], index: 1, kind: input, shape index: {}]   ;;  %s3027_s2 = inlined_call_operand.hbm [shape: f32[2,8,32], index: 2, kind: input, shape index: {}]   ;;  %s3028_s3 = inlined_call_operand.hbm [shape: f32[2,8,8], index: 3, kind: input, shape index: {}]   ;;  %s3029_s4 = inlined_call_operand.hbm [shape: f32[32,32], index: 4, kind: input, shape index: {}]   ;;  %s3030_s5 = inlined_call_operand.vmem [shape: f32[1,32], index: 5, kind: input, shape index: {}]   ;;  %s3031_s6 = inlined_call_operand.hbm [shape: f32[32,32], index: 6, kind: input, shape index: {}]   ;;  %s3032_s7 = inlined_call_operand.vmem [shape: f32[1,32], index: 7, kind: input, shape index: {}]   ;;  %s3033_s8 = inlined_call_operand.hbm [shape: f32[32,32], index: 8, kind: input, shape index: {}]   ;;  %s3034_s9 = inlined_call_operand.vmem [shape: f32[1,32], index: 9, kind: input, shape index: {}]   ;;  %s3035_s10 = inlined_call_operand.vmem [shape: f32[32,32], index: 10, kind: input, shape index: {}]   ;;  %s3036_s11 = inlined_call_operand.vmem [shape: f32[1,32], index: 11, kind: input, shape index: {}]   ;;  %s3037_s12 = inlined_call_operand.hbm [shape: f32[2,8,32], index: 12, kind: output, shape index: {}]  }
   0x1   :  { %3059 = sst [smem:[#allocation28_spill]] %s3025_s0 }
   0x2   :  { %3060 = sst [smem:[#allocation29_spill]] %s3026_s1 }
   0x3   :  { %3061 = sst [smem:[#allocation30_spill]] %s3029_s4 }
   0x4   :  { %3062 = sst [smem:[#allocation31_spill]] %s3031_s6 }
   0x5   :  { %3063 = sst [smem:[#allocation32_spill]] %s3034_s9 }
   0x6   :  { %3064 = sst [smem:[#allocation33_spill]] %s3035_s10 }
   0x7   :  { %3065 = sst [smem:[#allocation34_spill]] %s3036_s11 }
   0x8   :  { %3066 = sst [smem:[#allocation35_spill]] %s3037_s12 }
   0x9   :  { %17 = vsyncpa [#allocation3], 0 }
   0xa   :  { %19 = vsyncpa [#allocation3 + $0x1], 0 }
   0xb   :  { %20 = vsyncpa [#allocation6], 0 }
   0xc   :  { %22 = vsyncpa [#allocation6 + $0x1], 0 }
   0xd   :  { %23 = vsyncpa [#allocation9], 0 }
   0xe   :  { %25 = vsyncpa [#allocation9 + $0x1], 0 }
   0xf   :  { %26 = vsyncpa [#allocation12], 0 }
  0x10   :  { %27 = vsyncpa [#allocation4], 0 }
  0x11   :  { %29 = vsyncpa [#allocation4 + $0x1], 0  ;;  %s2524_s21 = smov 0   ;;  %s2526_s22 = smov 0  }
  0x12   :  { %s2528_s23 = smov 0   ;;  %s2530_s24 = smov 0  }
  0x13   :  { %s2532_s25 = smov 0   ;;  %s2534_s26 = smov 0  }
  0x14 LB: > { %3067 = sst [smem:[#allocation21_spill]] %s2418_s21  ;;  %s2555_s27 = sadd.s32 4294967295, %s2438_s26   ;;  %s2438_s26 = sphi %s2534_s26, %s35_s26   ;;  %s2434_s25 = sphi %s2532_s25, %s3116_s25   ;;  %s2430_s24 = sphi %s2530_s24, %s3115_s24   ;;  %s2426_s23 = sphi %s2528_s23, %s3119_s23   ;;  %s2422_s22 = sphi %s2526_s22, %s3118_s22   ;;  %s2418_s21 = sphi %s2524_s21, %s3117_s21  }
  0x15   : > { %3068 = sst [smem:[#allocation22_spill]] %s2430_s24  ;;  %s1810_s28 = sadd.s32 4294967294, %s2438_s26  }
  0x16   : > { %3069 = sst [smem:[#allocation23_spill]] %s2434_s25  ;;  %p69_p0 = scmp.ne.s32.totalorder %s2422_s22, %s2418_s21 }
  0x17   : > { %p3041_p1 = scmp.eq.s32.totalorder %s2555_s27, 0  ;;  %p349_p3 = scmp.eq.s32.totalorder %s1810_s28, 1 }
  0x18   : > { %p1811_p5 = scmp.ge.s32.totalorder %s2438_s26, 1  ;;  %p356_p7 = scmp.lt.s32.totalorder %s2438_s26, 3 }
  0x19   : > { %p2564_p4 = por %p3041_p1, %p69_p0  ;;  %p2569_p6 = por %p349_p3, %p69_p0 }
  0x1a   : > { %p2574_p8 = pnand %p1811_p5, %p356_p7  ;;  %s2440_s14 = smov [#allocation10]  }
  0x1b   : > { %s3070_s29 = scalar_select %p2564_p4, 1, 0 }
  0x1c   : > { %s3071_s30 = scalar_select %p2569_p6, 1, 0 }
  0x1d   : > { %s3073_s13 = scalar_select %p2574_p8, 1, 0 }
  0x1e   : > { %3072 = sst [smem:[#allocation24_spill]] %s3071_s30  ;;  %s368_s15 = sshll.u32 %s2440_s14, 4  ;;  %s2578_s15 = int_to_ptr.vmem [resolvable:$true] %s368_s15 }
  0x1f   : > { %p2023_p9 = pneg %p2574_p8  ;;  %s2441_s17 = smov [#allocation11]  }
  0x20   : > { %s384_s18 = sshll.u32 %s2441_s17, 4  ;;  %s3075_s4 = sld [smem:[#allocation30_spill]]  ;;  %s2589_s18 = int_to_ptr.vmem [resolvable:$true] %s384_s18 }
  0x21   : > { %p2585_p11 = pnand %p2023_p9, %p3041_p1 }
  0x23   : > { %s3074_s16 = scalar_select %p2585_p11, 1, 0 }
  0x24   : > { %p2599_p13 = pneg %p2585_p11 }
  0x26   : > { %s2136_s28 = scalar_lea.hbm %s3075_s4, 512 }
  0x27   : > { %p2137_p12 = scmp.ne.s32.totalorder %s3075_s4, %s2136_s28  ;;  %p2143_p5 = scmp.lt.u32.totalorder %s2136_s28, %s3075_s4 }
  0x28   : > { %s3076_s21 = scalar_select %p2599_p13, 1, 0 }
  0x29   : > { %p2139_p0 = pnand %p2599_p13, %p2137_p12 }
  0x2b   : > { %p2140_p3 = pneg %p2139_p0 }
  0x2d   : > { %p2145_p7 = pnand %p2143_p5, %p2140_p3 }
  0x2f   : > { %2148 = shalt.err (!%p2145_p7)
}
  0x30   : > { %s2149_s30 = scalar_lea.vmem %s2578_s15, 512  ;;  %p2157_p2 = scmp.lt.s32.totalorder %s2578_s15, %s2578_s15 }
  0x31   : > { %p2150_p9 = scmp.ne.s32.totalorder %s2578_s15, %s2149_s30  ;;  %p2158_p6 = scmp.lt.s32.totalorder %s2149_s30, %s2149_s30 }
  0x33   : > { %p2152_p10 = pnand %p2150_p9, %p2599_p13  ;;  %p2159_p12 = por %p2158_p6, %p2157_p2 }
  0x35   : > { %p2153_p1 = pneg %p2152_p10 }
  0x37   : > { %p2160_p0 = pnand %p2159_p12, %p2153_p1 }
  0x39   : > { %2163 = shalt.err (!%p2160_p0)
}
  0x3a   : > { %s3043_s19 = smov 128   ;;  %s3044_s12 = smov 8  }
  0x3b   : > { %2026 = dma.hbm_to_vmem [thread:$0]  (!%p2585_p11), %s3075_s4, 512, %s2578_s15, [#allocation9], %s3043_s19, %s3043_s19, %s3044_s12  }
  0x3c   : > { %s3077_s6 = sld [smem:[#allocation31_spill]] }
  0x42   : > { %s2164_s30 = scalar_lea.hbm %s3077_s6, 512 }
  0x43   : > { %p2165_p1 = scmp.ne.s32.totalorder %s3077_s6, %s2164_s30  ;;  %p2171_p10 = scmp.lt.u32.totalorder %s2164_s30, %s3077_s6 }
  0x45   : > { %p2167_p2 = pnand %p2165_p1, %p2599_p13 }
  0x47   : > { %p2168_p6 = pneg %p2167_p2 }
  0x49   : > { %p2173_p3 = pnand %p2171_p10, %p2168_p6 }
  0x4b   : > { %2176 = shalt.err (!%p2173_p3)
}
  0x4c   : > { %s2177_s15 = scalar_lea.vmem %s2589_s18, 512  ;;  %p2185_p12 = scmp.lt.s32.totalorder %s2589_s18, %s2589_s18 }
  0x4d   : > { %p2178_p5 = scmp.ne.s32.totalorder %s2589_s18, %s2177_s15  ;;  %p2186_p0 = scmp.lt.s32.totalorder %s2177_s15, %s2177_s15 }
  0x4f   : > { %p2180_p7 = pnand %p2178_p5, %p2599_p13  ;;  %p2187_p1 = por %p2186_p0, %p2185_p12 }
  0x51   : > { %p2181_p9 = pneg %p2180_p7 }
  0x53   : > { %p2188_p2 = pnand %p2187_p1, %p2181_p9 }
  0x55   : > { %2191 = shalt.err (!%p2188_p2)
}
  0x56   : > { %2029 = dma.hbm_to_vmem [thread:$0]  (!%p2585_p11), %s3077_s6, 512, %s2589_s18, [#allocation12], %s3043_s19, %s3043_s19, %s3044_s12  }
  0x57   : > { %s47_s11 = sadd.s32 1, %s2434_s25  ;;  %s56_s24 = sadd.s32 1, %s2426_s23 }
  0x58   : > { %p49_p6 = scmp.ge.s32.totalorder %s47_s11, 2  ;;  %p63_p10 = scmp.ne.s32.totalorder %s2426_s23, %s2422_s22 }
  0x59   : > { %p64_p3 = scmp.eq.s32.totalorder %s2438_s26, 0  ;;  %p2053_p5 = scmp.lt.s32.totalorder %s2438_s26, 2 }
  0x5a   : > { %s3121_s11 = smov (%p49_p6, %s47_s11), 0  ;;  %p3079_p9 = scmp.eq.s32.totalorder %s2555_s27, 1 }
  0x5b   : > { %3078 = sst [smem:[#allocation25_spill]] %s3121_s11  ;;  %p65_p7 = por %p64_p3, %p63_p10 }
  0x5c   : > { %p2659_p12 = por %p3079_p9, %p63_p10  ;;  %s51_s28 = ssub.s32 %s2434_s25, %s3121_s11 }
  0x5d   : > { %s3045_s18 = sand.u32 1, %s2426_s23   ;;  %p54_p0 = scmp.eq.s32.totalorder %s51_s28, 0 }
  0x5e   : > { %s3080_s20 = scalar_select %p2659_p12, 1, 0 }
  0x5f   : > { %s2668_s14 = sshll.u32 %s3045_s18, 3  ;;  %s2671_s17 = sshll.u32 %s2434_s25, 7 }
  0x60   : > { %3081 = sst [smem:[#allocation26_spill]] %s3080_s20  ;;  %p2673_p1 = pnand %p2053_p5, %p65_p7 }
  0x61   : > { %s2678_s15 = scalar_select %p54_p0, %s2426_s23, %s56_s24  }
  0x62   : > { %s3082_s30 = scalar_select %p2673_p1, 1, 0 }
  0x63   : > { %3083 = sst [smem:[#allocation27_spill]] %s2678_s15  ;;  %s3050_s9 = sand.u32 1, %s2438_s26  }
  0x64   : > { %s3084_s1 = sld [smem:[#allocation29_spill]]  ;;  %s446_s28 = scalar_lea.vmem [#allocation5], %s2668_s14 }
  0x65   : > { %s453_s18 = sshll.u32 %s446_s28, 4  ;;  %s2692_s4 = scalar_lea.sflag [#allocation6], %s3050_s9  ;;  %s2688_s18 = int_to_ptr.vmem [resolvable:$true] %s453_s18 }
  0x66   : > { %p2698_p6 = pneg %p2673_p1 }
  0x6a   : > { %s2685_s12 = scalar_lea.hbm %s3084_s1, %s2671_s17  ;;  %s2197_s28 = scalar_lea.hbm %s3084_s1, 256 }
  0x6b   : > { %s2192_s6 = scalar_lea.hbm %s2685_s12, 128  ;;  %p2198_p5 = scmp.lt.u32.totalorder %s2685_s12, %s3084_s1 }
  0x6c   : > { %p2193_p2 = scmp.ne.s32.totalorder %s2685_s12, %s2192_s6  ;;  %p2199_p7 = scmp.lt.u32.totalorder %s2197_s28, %s2192_s6 }
  0x6d   : > { %p2201_p0 = scmp.lt.u32.totalorder %s2192_s6, %s2685_s12 }
  0x6e   : > { %p2195_p10 = pnand %p2698_p6, %p2193_p2  ;;  %p2200_p9 = por %p2199_p7, %p2198_p5 }
  0x70   : > { %p2196_p3 = pneg %p2195_p10  ;;  %p2202_p12 = por %p2201_p0, %p2200_p9 }
  0x72   : > { %p2203_p4 = pnand %p2202_p12, %p2196_p3 }
  0x74   : > { %2206 = shalt.err (!%p2203_p4)
}
  0x75   : > { %s2207_s9 = scalar_lea.vmem %s2688_s18, 128  ;;  %s2444_s19 = smov [#allocation5]  }
  0x76   : > { %p2208_p2 = scmp.ne.s32.totalorder %s2688_s18, %s2207_s9  ;;  %s2212_s10 = sshll.u32 %s2444_s19, 4  ;;  %s2213_s10 = int_to_ptr.vmem [resolvable:$false] %s2212_s10 }
  0x77   : > { %s2214_s25 = scalar_lea.vmem %s2213_s10, 256  ;;  %p2215_p11 = scmp.lt.s32.totalorder %s2688_s18, %s2213_s10 }
  0x78   : > { %p2210_p10 = pnand %p2208_p2, %p2698_p6  ;;  %p2216_p13 = scmp.lt.s32.totalorder %s2214_s25, %s2207_s9 }
  0x7a   : > { %p2211_p8 = pneg %p2210_p10  ;;  %p2217_p5 = por %p2216_p13, %p2215_p11 }
  0x7c   : > { %p2218_p7 = pnand %p2217_p5, %p2211_p8 }
  0x7e   : > { %2221 = shalt.err (!%p2218_p7)
}
  0x7f   : > { %2039 = dma.hbm_to_vmem [thread:$0]  (!%p2673_p1), %s2685_s12, 128, %s2688_s18, %s2692_s4  }
  0x80   : > { %s2445_s6 = smov [#allocation13]   ;;  %s3086_s0 = sld [smem:[#allocation28_spill]] }
  0x81   : > { %s400_s11 = sshll.u32 %s2445_s6, 4  ;;  %s2222_s25 = scalar_lea.hbm %s3033_s8, 512  ;;  %s401_s11 = int_to_ptr.vmem [resolvable:$true] %s400_s11 }
  0x82   : > { %p2223_p4 = scmp.ne.s32.totalorder %s3033_s8, %s2222_s25  ;;  %p3087_p8 = scmp.ne.s32.totalorder %s3076_s21, 0 }
  0x83   : > { %p2229_p12 = scmp.lt.u32.totalorder %s2222_s25, %s3033_s8 }
  0x84   : > { %p2225_p11 = pnand %p2223_p4, %p3087_p8 }
  0x86   : > { %s2726_s1 = scalar_lea.hbm %s3086_s0, %s2671_s17  ;;  %p2226_p13 = pneg %p2225_p11 }
  0x88   : > { %p2231_p3 = pnand %p2229_p12, %p2226_p13 }
  0x8a   : > { %2234 = shalt.err (!%p2231_p3)
}
  0x8b   : > { %s2235_s6 = scalar_lea.vmem %s401_s11, 512  ;;  %p2243_p10 = scmp.lt.s32.totalorder %s401_s11, %s401_s11 }
  0x8c   : > { %p2236_p9 = scmp.ne.s32.totalorder %s401_s11, %s2235_s6  ;;  %p2244_p5 = scmp.lt.s32.totalorder %s2235_s6, %s2235_s6 }
  0x8e   : > { %p2238_p0 = pnand %p2236_p9, %p3087_p8  ;;  %p2245_p7 = por %p2244_p5, %p2243_p10 }
  0x90   : > { %p2239_p2 = pneg %p2238_p0 }
  0x92   : > { %p2246_p1 = pnand %p2245_p7, %p2239_p2 }
  0x94   : > { %2249 = shalt.err (!%p2246_p1)
}
  0x95   : > { %p3088_p4 = scmp.ne.s32.totalorder %s3074_s16, 0  ;;  %s3089_s20 = smov 8  }
  0x96   : > { %s3090_s15 = smov 128   ;;  %s427_s21 = scalar_lea.vmem [#allocation2], %s2668_s14 }
  0x97   : > { %2032 = dma.hbm_to_vmem [thread:$0]  (!%p3088_p4), %s3033_s8, 512, %s401_s11, [#allocation12], %s3090_s15, %s3090_s15, %s3089_s20  }
  0x98   : > { %s435_s9 = sshll.u32 %s427_s21, 4  ;;  %s2756_s25 = scalar_lea.hbm %s3027_s2, %s2671_s17  ;;  %s2750_s9 = int_to_ptr.vmem [resolvable:$true] %s435_s9 }
  0x99   : > { %s3091_s12 = sand.u32 1, %s2426_s23   ;;  %s2250_s6 = scalar_lea.hbm %s2726_s1, 128 }
  0x9a   : > { %s424_s18 = scalar_lea.sflag [#allocation3], %s3091_s12  ;;  %p2251_p1 = scmp.ne.s32.totalorder %s2726_s1, %s2250_s6 }
  0x9b   : > { %s2255_s11 = scalar_lea.hbm %s3086_s0, 256  ;;  %p2256_p13 = scmp.lt.u32.totalorder %s2726_s1, %s3086_s0 }
  0x9c   : > { %p2253_p8 = pnand %p2251_p1, %p2698_p6  ;;  %p2257_p12 = scmp.lt.u32.totalorder %s2255_s11, %s2250_s6 }
  0x9d   : > { %p2259_p9 = scmp.lt.u32.totalorder %s2250_s6, %s2726_s1 }
  0x9e   : > { %p2254_p11 = pneg %p2253_p8  ;;  %p2258_p3 = por %p2257_p12, %p2256_p13 }
  0xa0   : > { %p2260_p0 = por %p2259_p9, %p2258_p3 }
  0xa2   : > { %p2261_p2 = pnand %p2260_p0, %p2254_p11 }
  0xa4   : > { %2264 = shalt.err (!%p2261_p2)
}
  0xa5   : > { %s2265_s21 = scalar_lea.vmem %s2750_s9, 128  ;;  %s2446_s16 = smov [#allocation2]  }
  0xa6   : > { %p2266_p10 = scmp.ne.s32.totalorder %s2750_s9, %s2265_s21  ;;  %s2270_s10 = sshll.u32 %s2446_s16, 4  ;;  %s2271_s10 = int_to_ptr.vmem [resolvable:$false] %s2270_s10 }
  0xa7   : > { %s2272_s12 = scalar_lea.vmem %s2271_s10, 256  ;;  %p2273_p4 = scmp.lt.s32.totalorder %s2750_s9, %s2271_s10 }
  0xa8   : > { %p2268_p5 = pnand %p2266_p10, %p2698_p6  ;;  %p2274_p1 = scmp.lt.s32.totalorder %s2272_s12, %s2265_s21 }
  0xaa   : > { %p2269_p7 = pneg %p2268_p5  ;;  %p2275_p8 = por %p2274_p1, %p2273_p4 }
  0xac   : > { %p2276_p13 = pnand %p2275_p8, %p2269_p7 }
  0xae   : > { %2279 = shalt.err (!%p2276_p13)
}
  0xaf   : > { %p3092_p11 = scmp.ne.s32.totalorder %s3082_s30, 0  ;;  %s464_s6 = scalar_lea.vmem [#allocation7], %s2668_s14 }
  0xb0   : > { %s471_s28 = sshll.u32 %s464_s6, 4  ;;  %s2786_s20 = scalar_lea.hbm %s3028_s3, %s2671_s17  ;;  %s472_s28 = int_to_ptr.vmem [resolvable:$true] %s471_s28 }
  0xb1   : > { %2036 = dma.hbm_to_vmem [thread:$0]  (!%p3092_p11), %s2726_s1, 128, %s2750_s9, %s424_s18  }
  0xb2   : > { %s2280_s15 = scalar_lea.hbm %s2756_s25, 128  ;;  %s2285_s10 = scalar_lea.hbm %s3027_s2, 256 }
  0xb3   : > { %p2281_p12 = scmp.ne.s32.totalorder %s2756_s25, %s2280_s15  ;;  %p2286_p0 = scmp.lt.u32.totalorder %s2756_s25, %s3027_s2 }
  0xb4   : > { %p2287_p2 = scmp.lt.u32.totalorder %s2285_s10, %s2280_s15  ;;  %p2289_p5 = scmp.lt.u32.totalorder %s2280_s15, %s2756_s25 }
  0xb5   : > { %p2283_p3 = pnand %p2281_p12, %p2698_p6 }
  0xb6   : > { %p2288_p10 = por %p2287_p2, %p2286_p0 }
  0xb7   : > { %p2284_p9 = pneg %p2283_p3 }
  0xb8   : > { %p2290_p7 = por %p2289_p5, %p2288_p10 }
  0xba   : > { %p2291_p4 = pnand %p2290_p7, %p2284_p9 }
  0xbc   : > { %2294 = shalt.err (!%p2291_p4)
}
  0xbd   : > { %s2295_s1 = scalar_lea.vmem %s472_s28, 128  ;;  %s2447_s17 = smov [#allocation7]  }
  0xbe   : > { %p2296_p1 = scmp.ne.s32.totalorder %s472_s28, %s2295_s1  ;;  %s2300_s9 = sshll.u32 %s2447_s17, 4  ;;  %s2301_s9 = int_to_ptr.vmem [resolvable:$false] %s2300_s9 }
  0xbf   : > { %s2302_s18 = scalar_lea.vmem %s2301_s9, 256  ;;  %p2303_p12 = scmp.lt.s32.totalorder %s472_s28, %s2301_s9 }
  0xc0   : > { %p2298_p8 = pnand %p2296_p1, %p2698_p6  ;;  %p2304_p3 = scmp.lt.s32.totalorder %s2302_s18, %s2295_s1 }
  0xc2   : > { %p2299_p13 = pneg %p2298_p8  ;;  %p2305_p11 = por %p2304_p3, %p2303_p12 }
  0xc4   : > { %p2306_p0 = pnand %p2305_p11, %p2299_p13 }
  0xc6   : > { %2309 = shalt.err (!%p2306_p0)
}
  0xc7   : > { %p3093_p2 = scmp.ne.s32.totalorder %s3082_s30, 0  ;;  %s482_s0 = scalar_lea.vmem [#allocation8], %s2668_s14 }
  0xc8   : > { %s490_s6 = sshll.u32 %s482_s0, 4  ;;  %s3094_s19 = sand.u32 1, %s2438_s26   ;;  %s491_s6 = int_to_ptr.vmem [resolvable:$true] %s490_s6 }
  0xc9   : > { %2042 = dma.hbm_to_vmem [thread:$0]  (!%p3093_p2), %s2756_s25, 128, %s472_s28, %s2692_s4  }
  0xca   : > { %s479_s11 = scalar_lea.sflag [#allocation9], %s3094_s19  ;;  %s2310_s15 = scalar_lea.hbm %s2786_s20, 128 }
  0xcb   : > { %p2311_p11 = scmp.ne.s32.totalorder %s2786_s20, %s2310_s15  ;;  %s2315_s10 = scalar_lea.hbm %s3028_s3, 256 }
  0xcc   : > { %p2316_p5 = scmp.lt.u32.totalorder %s2786_s20, %s3028_s3  ;;  %p2317_p7 = scmp.lt.u32.totalorder %s2315_s10, %s2310_s15 }
  0xcd   : > { %p2313_p9 = pnand %p2311_p11, %p2698_p6  ;;  %p2319_p1 = scmp.lt.u32.totalorder %s2310_s15, %s2786_s20 }
  0xce   : > { %p2318_p4 = por %p2317_p7, %p2316_p5 }
  0xcf   : > { %p2314_p10 = pneg %p2313_p9 }
  0xd0   : > { %p2320_p8 = por %p2319_p1, %p2318_p4 }
  0xd2   : > { %p2321_p13 = pnand %p2320_p8, %p2314_p10 }
  0xd4   : > { %2324 = shalt.err (!%p2321_p13)
}
  0xd5   : > { %s2325_s4 = scalar_lea.vmem %s491_s6, 128  ;;  %s2448_s14 = smov [#allocation8]  }
  0xd6   : > { %p2326_p12 = scmp.ne.s32.totalorder %s491_s6, %s2325_s4  ;;  %s2330_s25 = sshll.u32 %s2448_s14, 4  ;;  %s2331_s25 = int_to_ptr.vmem [resolvable:$false] %s2330_s25 }
  0xd7   : > { %s2332_s28 = scalar_lea.vmem %s2331_s25, 256  ;;  %p2333_p11 = scmp.lt.s32.totalorder %s491_s6, %s2331_s25 }
  0xd8   : > { %p2328_p3 = pnand %p2326_p12, %p2698_p6  ;;  %p2334_p9 = scmp.lt.s32.totalorder %s2332_s28, %s2325_s4 }
  0xda   : > { %p2329_p0 = pneg %p2328_p3  ;;  %p2335_p2 = por %p2334_p9, %p2333_p11 }
  0xdc   : > { %p2336_p5 = pnand %p2335_p2, %p2329_p0 }
  0xde   : > { %2339 = shalt.err (!%p2336_p5)
}
  0xdf   : > { %p3095_p7 = scmp.ne.s32.totalorder %s3082_s30, 0  ;;  %p3096_p10 = scmp.ne.s32.totalorder %s3073_s13, 0 }
  0xe0   : > { %s2829_s24 = sand.u32 (!%p3096_p10), 1, %s2422_s22   ;;  %p3097_p6 = scmp.ne.s32.totalorder (!%p3096_p10), %s3070_s29, 0 }
  0xe1   : > { %2045 = dma.hbm_to_vmem [thread:$0]  (!%p3095_p7), %s2786_s20, 128, %s491_s6, %s479_s11  }
  0xe2   : > { %499 = sbr.rel (%p3096_p10) target bundleno = 1682 (0x692), region = 68  ;;  %s2832_s17 = sshll.u32 (!%p3096_p10), %s2829_s24, 3 }
  0xe3   : > { %s502_s9 = scalar_lea.sflag (!%p3096_p10), [#allocation3], %s2829_s24  ;;  %s505_s18 = scalar_lea.vmem (!%p3096_p10), [#allocation2], %s2832_s17 }
  0xe9   : > { %2393 = dma.done.wait (%p3097_p6), %s502_s9, 128  }
  0xea   : > { %2395 = vsyncadd (%p3097_p6), %s502_s9, 4294967168  ;;  %s510_s13 = sand.u32 1, %s2555_s27   ;;  %s514_s20 = scalar_lea.vmem [#allocation5], %s2832_s17 }
  0xeb   : > { %s511_s30 = scalar_lea.sflag [#allocation6], %s510_s13 }
  0xec   : > { %2397 = dma.done.wait (%p3097_p6), %s511_s30, 256  }
  0xed   : > { %2399 = vsyncadd (%p3097_p6), %s511_s30, 4294967040  ;;  %s523_s0 = scalar_lea.vmem [#allocation7], %s2832_s17  ;;  %s529_s6 = scalar_lea.sflag [#allocation9], %s510_s13 }
  0xee   : > { %s532_s19 = scalar_lea.vmem [#allocation8], %s2832_s17 }
  0xef   : > { %2401 = dma.done.wait (%p3097_p6), %s529_s6, 128  }
  0xf0   : > { %2403 = vsyncadd (%p3097_p6), %s529_s6, 4294967168  ;;  %p3098_p2 = scmp.eq.s32.totalorder %s2555_s27, 0 }
  0xf2   : > { %2405 = dma.done.wait (%p3098_p2), [#allocation9], 512   ;;  %p3099_p4 = pmov %p3098_p2 }
  0xf3   : > { %p3100_p1 = pmov %p3098_p2 }
  0xf4   : > { %2407 = vsyncadd (%p3099_p4), [#allocation9], 4294966784 }
  0xf5   : > { %2409 = dma.done.wait (%p3100_p1), [#allocation12], 1024   ;;  %p3101_p8 = pmov %p3100_p1 }
  0xf6   : > { %v2449_v0 = vmov 0.0|0.0   ;;  %vm2450_vm0 = vmmov 0   ;;  %v2451_v1 = vmov 0.0   ;;  %v688_v2 = vld [vmem:[#allocation11] sm:$0xff]  ;;  %v689_v3 = vld [vmem:[#allocation11 + $0x8] sm:$0xff]  ;;  %v690_v7 = vld [vmem:[#allocation11 + $0x10] sm:$0xff] }
  0xf7   : > { %2411 = vsyncadd (%p3101_p8), [#allocation12], 4294966272  ;;  %1983 = vmatprep.subr.bf16.mxu1 %v2449_v0  ;;  %1977 = vmatprep.subr.bf16.mxu0 %v2449_v0  ;;  %v603_v4 = vld [vmem:[#allocation10] sm:$0xff]  ;;  %v1984_v5 = vpack.c.bf16 %v689_v3, %v688_v2  ;;  %v604_v6 = vld [vmem:[#allocation10 + $0x8] sm:$0xff]  ;;  %vm614_vm1 = vcmask 261120   ;;  %vm882_vm2 = vcmask 64512  }
  0xf8   : > { %1912 = vmatprep.mubr.msk.f32.mxu1 %vm2450_vm0, %v2451_v1  ;;  %1901 = vmatprep.mubr.msk.f32.mxu0 %vm2450_vm0, %v2451_v1  ;;  %v691_v8 = vld [vmem:[#allocation11 + $0x18] sm:$0xff]  ;;  %v1978_v9 = vpack.c.bf16 %v604_v6, %v603_v4  ;;  %v605_v10 = vld [vmem:[#allocation10 + $0x10] sm:$0xff]  ;;  %v2872_v15 = vld [vmem:[%s505_s18] sm:$0xff]  ;;  %s2452_s21 = smov 112   ;;  %s2453_s16 = smov 120   ;;  %vm1528_vm3 = vcmask 130048  }
  0xf9   : > { %v606_v11 = vld [vmem:[#allocation10 + $0x18] sm:$0xff]  ;;  %1985 = vmatpush3.bf16.msra.mxu1 %v1984_v5  ;;  %v1987_v12 = vpack.c.bf16 %v691_v8, %v690_v7  ;;  %v1835_v16 = vld [vmem:[%s3032_s7] ss:$0 sm:$0xff]  ;;  %v773_v25 = vld [vmem:[#allocation13 + $0x8] sm:$0xff]  ;;  %s2454_s10 = smov 104   ;;  %s3102_s4 = sld [smem:[#allocation32_spill]] }
  0xfa   : > { %1979 = vmatpush3.bf16.msra.mxu0 %v1978_v9  ;;  %1986 = vmatprep.subr.bf16.mxu1 %v2449_v0  ;;  %v1981_v13 = vpack.c.bf16 %v606_v11, %v605_v10  ;;  %v601_v14 = vld [vmem:[%s514_s20] sm:$0xff]  ;;  %v1833_v18 = vld [vmem:[%s3030_s5] ss:$0 sm:$0xff]  ;;  %s3103_s28 = sld [smem:[#allocation33_spill]]  ;;  %s2455_s6 = smov 8   ;;  %vm1530_vm4 = vcmask 195584  }
  0xfb   : > { %1980 = vmatprep.subr.bf16.mxu0 %v2449_v0  ;;  %v772_v24 = vld [vmem:[#allocation13] sm:$0xff]  ;;  %v774_v26 = vld [vmem:[#allocation13 + $0x10] sm:$0xff]  ;;  %v775_v28 = vld [vmem:[#allocation13 + $0x18] sm:$0xff]  ;;  %s3104_s27 = sld [smem:[#allocation22_spill]]  ;;  %s2457_s29 = smov 24  }
  0xfc   : > { %v1990_v27 = vpack.c.bf16 %v773_v25, %v772_v24  ;;  %v1993_v29 = vpack.c.bf16 %v775_v28, %v774_v26  ;;  %v602_v30 = vld [vmem:[%s523_s0] sm:$0xff]  ;;  %v880_v37 = vld [vmem:[%s532_s19] sm:$0xff]  ;;  %s2456_s19 = smov 16   ;;  %s3105_s11 = sld [smem:[#allocation26_spill]] }
  0xfd   : > { %1988 = vmatpush3.bf16.msra.mxu1 %v1987_v12  ;;  %v881_v38 = vmul.f32 -1e+09, %v880_v37  ;;  %s599_s12 = scalar_lea.vmem [#allocation14], %s2832_s17  ;;  %s3107_s25 = sld [smem:[#allocation35_spill]] }
  0xfe   : > { %1982 = vmatpush3.bf16.msra.mxu0 %v1981_v13  ;;  %1926 = vmatprep.subr.mxu1 %v2451_v1  ;;  %s1634_s1 = sshll.u32 %s599_s12, 4  ;;  %s1620_s13 = scalar_lea.sflag [#allocation4], %s2829_s24  ;;  %s2977_s1 = int_to_ptr.vmem [resolvable:$true] %s1634_s1 }
  0xff   : > { %1989 = vmatprep.subr.bf16.mxu0 %v2449_v0  ;;  %v1837_v43 = vld [vmem:[%s3102_s4] ss:$0 sm:$0xff]  ;;  %s2340_s30 = scalar_lea.vmem %s2977_s1, 128  ;;  %s2458_s17 = smov [#allocation14]  }
 0x100   : > { %1913 = vmatmul.mubr.msk.f32.vlgmr.msra.gmra.mrb[0].mxu1 %vm614_vm1, %v601_v14  ;;  %p2341_p13 = scmp.ne.s32.totalorder %s2977_s1, %s2340_s30  ;;  %s2344_s20 = sshll.u32 %s2458_s17, 4  ;;  %s2345_s20 = int_to_ptr.vmem [resolvable:$false] %s2344_s20 }
 0x101   : > { %1902 = vmatmul.mubr.msk.f32.vlgmr.msra.gmra.mrb[0].mxu0 %vm614_vm1, %v2872_v15  ;;  %1928 = vmatprep.mubr.msk.f32.mxu1 %vm2450_vm0, %v2451_v1  ;;  %s2346_s0 = scalar_lea.vmem %s2345_s20, 256  ;;  %p2347_p11 = scmp.lt.s32.totalorder %s2977_s1, %s2345_s20 }
 0x102   : > { %1923 = vmatprep.mubr.msk.f32.mxu0 %vm2450_vm0, %v2451_v1  ;;  %1991 = vmatpush3.bf16.msra.mxu0 %v1990_v27  ;;  %p3109_p12 = scmp.ne.s32.totalorder %s3105_s11, 0  ;;  %p2348_p9 = scmp.lt.s32.totalorder %s2346_s0, %s2340_s30 }
 0x103   : > { %1992 = vmatprep.subr.bf16.mxu0 %v2449_v0  ;;  %s3108_s9 = smov %s3107_s25 }
 0x104   : > { %p2342_p3 = pnand %p2341_p13, %p3109_p12  ;;  %p2349_p5 = por %p2348_p9, %p2347_p11 }
 0x106   : > { %1994 = vmatpush3.bf16.msra.mxu0 %v1993_v29  ;;  %p2343_p0 = pneg %p2342_p3 }
 0x107   : > { %1946 = vmatprep.subr.mxu0 %v2451_v1 }
 0x108   : > { %p2350_p7 = pnand %p2349_p5, %p2343_p0 }
 0x109   : > { %1924 = vmatmul.mubr.msk.f32.vlgmr.msra.gmra.mrb[2].mxu0 %vm614_vm1, %v602_v30 }
 0x10a   : > { %1948 = vmatprep.mubr.msk.f32.mxu0 %vm2450_vm0, %v2451_v1 }
 0x1d3   : > { %v768_v17 = vpop.f32.mrb[0].mxu1 }
 0x1d4   : > { %v769_v19 = vadd.f32 %v1835_v16, %v768_v17  ;;  %v1914_v20 = vpop.f32.mrb[1].mxu1  ;;  %v684_v21 = vpop.f32.mrb[0].mxu0 }
 0x1d5   : > { %v1903_v22 = vpop.f32.mrb[1].mxu0  ;;  %v685_v23 = vadd.f32 %v1833_v18, %v684_v21 }
 0x1d6   : > { %866 = vrot.lane.b32.xlu1 %v769_v19, %s2452_s21  ;;  %864 = vrot.lane.b32.xlu0 %v769_v19, %s2453_s16 }
 0x1d7   : > { %1927 = vmatpush3.xpose.msk.msra.mxu1 %vm882_vm2, %v769_v19 }
 0x1d8   : > { %1931 = vmatprep.subr.mxu1 %v2451_v1 }
 0x1da   : > { %1929 = vmatmul.mubr.msk.f32.vlgmr.msra.gmra.mrb[2].mxu1 %vm882_vm2, %v685_v23  ;;  %859 = vrot.lane.b32.xlu1 %v685_v23, %s2452_s21 }
 0x1db   : > { %857 = vrot.lane.b32.xlu0 %v685_v23, %s2453_s16  ;;  %1933 = vmatprep.mubr.msk.f32.mxu1 %vm2450_vm0, %v2451_v1 }
 0x1dc   : > { %v852_v44 = vpop.f32.mrb[2].mxu0 }
 0x1dd   : > { %v853_v45 = vadd.f32 %v1837_v43, %v852_v44  ;;  %v1925_v46 = vpop.f32.mrb[3].mxu0 }
 0x1de   : > { %861 = vrot.lane.b32.xlu1 %v685_v23, %s2454_s10 }
 0x1df   : > { %868 = vrot.lane.b32.xlu0 %v769_v19, %s2454_s10  ;;  %1947 = vmatpush3.msra.mxu0 %v853_v45 }
 0x1e0   : > { %1956 = vmatprep.subr.mxu0 %v2451_v1 }
 0x248   : > { %v865_v31 = vpop.permute.xlu0 %864  ;;  %v867_v32 = vpop.permute.xlu1 %866 }
 0x249   : > { %1932 = vmatpush3.xpose.msk.msra.mxu1 %vm882_vm2, %v865_v31 }
 0x24a   : > { %1936 = vmatprep.subr.mxu1 %v2451_v1 }
 0x24c   : > { %v860_v34 = vpop.permute.xlu1 %859 }
 0x24d   : > { %v858_v33 = vpop.permute.xlu0 %857 }
 0x24e   : > { %1934 = vmatmul.mubr.msk.f32.vlgmr.msra.gmra.mrb[4].mxu1 %vm882_vm2, %v858_v33 }
 0x24f   : > { %1937 = vmatpush3.xpose.msk.msra.mxu1 %vm882_vm2, %v867_v32  ;;  %1938 = vmatprep.mubr.msk.f32.mxu1 %vm2450_vm0, %v2451_v1 }
 0x250   : > { %1941 = vmatprep.subr.mxu1 %v2451_v1  ;;  %v862_v36 = vpop.permute.xlu1 %861 }
 0x251   : > { %v869_v35 = vpop.permute.xlu0 %868 }
 0x252   : > { %1939 = vmatmul.mubr.msk.f32.vlgmr.msra.gmra.mrb[6].mxu1 %vm882_vm2, %v860_v34 }
 0x253   : > { %1942 = vmatpush3.xpose.msk.msra.mxu1 %vm882_vm2, %v869_v35  ;;  %1943 = vmatprep.mubr.msk.f32.mxu1 %vm2450_vm0, %v2451_v1  ;;  %v1532_v35 = vld [vmem:[%s3103_s28] sm:$0xff] }
 0x254   : > { %1951 = vmatprep.subr.mxu1 %v2451_v1 }
 0x256   : > { %1944 = vmatmul.mubr.msk.f32.vlgmr.msra.gmra.mrb[8].mxu1 %vm882_vm2, %v862_v36  ;;  %v1533_v36 = vld [vmem:[%s3103_s28 + $0x8] sm:$0xff] }
 0x257   : > { %1953 = vmatprep.mubr.msk.f32.mxu1 %vm2450_vm0, %v2451_v1  ;;  %v1996_v37 = vpack.c.bf16 %v1533_v36, %v1532_v35 }
 0x2ad   : > { %v953_v39 = vpop.f32.mrb[2].mxu1 }
 0x2ae   : > { %v954_v40 = vadd.f32 %v953_v39, %v881_v38  ;;  %v1930_v41 = vpop.f32.mrb[3].mxu1 }
 0x2b0   : > { %v1179_v42 = vsel %vm882_vm2, %v954_v40, -inf }
 0x2b1   : > { %1180 = vmax.xlane.f32.xlu0 %v1179_v42 }
 0x321   : > { %v1027_v47 = vpop.f32.mrb[4].mxu1 }
 0x322   : > { %v1028_v48 = vadd.f32 %v1027_v47, %v881_v38  ;;  %v1935_v49 = vpop.f32.mrb[5].mxu1 }
 0x324   : > { %v1182_v50 = vsel %vm882_vm2, %v1028_v48, -inf }
 0x325   : > { %1183 = vmax.xlane.f32.xlu1 %v1182_v50  ;;  %v1101_v51 = vpop.f32.mrb[6].mxu1 }
 0x326   : > { %v1102_v52 = vadd.f32 %v1101_v51, %v881_v38  ;;  %v1940_v53 = vpop.f32.mrb[7].mxu1 }
 0x328   : > { %v1185_v54 = vsel %vm882_vm2, %v1102_v52, -inf }
 0x329   : > { %1186 = vmax.xlane.f32.xlu0 %v1185_v54  ;;  %v1175_v55 = vpop.f32.mrb[8].mxu1 }
 0x32a   : > { %v1176_v56 = vadd.f32 %v1175_v55, %v881_v38  ;;  %v1945_v57 = vpop.f32.mrb[9].mxu1  ;;  %v1535_v38 = vld [vmem:[%s3103_s28 + $0x18] sm:$0xff] }
 0x32c   : > { %v1188_v58 = vsel %vm882_vm2, %v1176_v56, -inf }
 0x32d   : > { %1189 = vmax.xlane.f32.xlu0 %v1188_v58 }
 0x336   : > { %871 = vrot.lane.b32.xlu1 %v853_v45, %s2453_s16  ;;  %s3106_s16 = sld [smem:[#allocation34_spill]] }
 0x33c   : > { %v1852_v51 = vld [vmem:[%s3106_s16] ss:$0 sm:$0xff] }
 0x33e   : > { %v1181_v59 = vpop.xlane.xlu0 %1180 }
 0x33f   : > { %v1191_v60 = vsub.f32 %v954_v40, %v1181_v59 }
 0x341   : > { %v1195_v61 = vmul.f32 1.442695, %v1191_v60 }
 0x343   : > { %2120 = vpow2.f32 %v1195_v61 }
 0x34d   : > { %v2121_v62 = vpop.eup %2120 }
 0x34e   : > { %v1203_v63 = vsel %vm882_vm2, %v2121_v62, 0.0 }
 0x35a   : > { %1204 = vadd.xlane.f32.xlu1 %v1203_v63 }
 0x3b2   : > { %v1184_v2 = vpop.xlane.xlu1 %1183 }
 0x3b3   : > { %v1192_v3 = vsub.f32 %v1028_v48, %v1184_v2 }
 0x3b5   : > { %v1197_v4 = vmul.f32 1.442695, %v1192_v3 }
 0x3b6   : > { %v1187_v5 = vpop.xlane.xlu0 %1186  ;;  %v872_v6 = vpop.permute.xlu1 %871 }
 0x3b7   : > { %2122 = vpow2.f32 %v1197_v4  ;;  %v1193_v7 = vsub.f32 %v1102_v52, %v1187_v5  ;;  %1952 = vmatpush3.msra.mxu1 %v872_v6  ;;  %v1616_v52 = vadd.f32 %v1852_v51, %v2872_v15 }
 0x3b8   : > { %1961 = vmatprep.subr.mxu1 %v2451_v1 }
 0x3b9   : > { %v1199_v8 = vmul.f32 1.442695, %v1193_v7 }
 0x3ba   : > { %v1190_v9 = vpop.xlane.xlu0 %1189 }
 0x3bb   : > { %2124 = vpow2.f32 %v1199_v8  ;;  %v1194_v10 = vsub.f32 %v1176_v56, %v1190_v9 }
 0x3bd   : > { %v1201_v11 = vmul.f32 1.442695, %v1194_v10 }
 0x3bf   : > { %2126 = vpow2.f32 %v1201_v11 }
 0x3c1   : > { %v2123_v12 = vpop.eup %2122 }
 0x3c2   : > { %v1206_v13 = vsel %vm882_vm2, %v2123_v12, 0.0 }
 0x3c3   : > { %1207 = vadd.xlane.f32.xlu0 %v1206_v13 }
 0x3c5   : > { %v2125_v14 = vpop.eup %2124 }
 0x3c6   : > { %v1209_v16 = vsel %vm882_vm2, %v2125_v14, 0.0 }
 0x3c7   : > { %1210 = vadd.xlane.f32.xlu1 %v1209_v16 }
 0x3c9   : > { %v2127_v17 = vpop.eup %2126 }
 0x3ca   : > { %v1212_v18 = vsel %vm882_vm2, %v2127_v17, 0.0 }
 0x3cb   : > { %1213 = vadd.xlane.f32.xlu0 %v1212_v18 }
 0x3d8   : > { %877 = vrot.lane.b32.xlu1 %v853_v45, %s2454_s10  ;;  %s1854_s10 = sshll.u32 %s3104_s27, 7 }
 0x3d9   : > { %s2975_s18 = scalar_lea.hbm %s3107_s25, %s1854_s10 }
 0x3e1   : > { %874 = vrot.lane.b32.xlu0 %v853_v45, %s2452_s21 }
 0x3e7   : > { %v1205_v19 = vpop.xlane.xlu1 %1204 }
 0x3e8   : > { %2128 = vrcp.f32 %v1205_v19 }
 0x3f2   : > { %v2129_v20 = vpop.eup %2128 }
 0x3f3   : > { %v1219_v21 = vmul.f32 %v2129_v20, %v2121_v62 }
 0x3f5   : > { %1949 = vmatmul.mubr.msk.f32.vlgmr.msra.gmra.mrb[4].mxu0 %vm882_vm2, %v1219_v21 }
 0x3f6   : > { %1958 = vmatprep.mubr.msk.f32.mxu0 %vm2450_vm0, %v2451_v1 }
 0x450   : > { %v1208_v22 = vpop.xlane.xlu0 %1207 }
 0x451   : > { %2130 = vrcp.f32 %v1208_v22 }
 0x454   : > { %v1211_v23 = vpop.xlane.xlu1 %1210 }
 0x455   : > { %2132 = vrcp.f32 %v1211_v23 }
 0x458   : > { %v1214_v24 = vpop.xlane.xlu0 %1213  ;;  %v878_v28 = vpop.permute.xlu1 %877 }
 0x459   : > { %2134 = vrcp.f32 %v1214_v24 }
 0x45b   : > { %v2131_v25 = vpop.eup %2130 }
 0x45c   : > { %v1220_v26 = vmul.f32 %v2131_v25, %v2123_v12  ;;  %v875_v27 = vpop.permute.xlu0 %874 }
 0x45d   : > { %1957 = vmatpush3.msra.mxu0 %v875_v27 }
 0x45e   : > { %1954 = vmatmul.mubr.msk.f32.vlgmr.msra.gmra.mrb[10].mxu1 %vm882_vm2, %v1220_v26  ;;  %1995 = vmatprep.subr.bf16.mxu0 %v2449_v0 }
 0x45f   : > { %v2133_v29 = vpop.eup %2132  ;;  %1962 = vmatpush3.msra.mxu1 %v878_v28  ;;  %1963 = vmatprep.mubr.msk.f32.mxu1 %vm2450_vm0, %v2451_v1 }
 0x460   : > { %v1221_v30 = vmul.f32 %v2133_v29, %v2125_v14 }
 0x462   : > { %1959 = vmatmul.mubr.msk.f32.vlgmr.msra.gmra.mrb[6].mxu0 %vm882_vm2, %v1221_v30 }
 0x463   : > { %v2135_v31 = vpop.eup %2134  ;;  %1974 = vmatprep.mubr.msk.f32.mxu0 %vm2450_vm0, %v2451_v1  ;;  %1997 = vmatpush3.bf16.msra.mxu0 %v1996_v37  ;;  %v1534_v1 = vld [vmem:[%s3103_s28 + $0x10] sm:$0xff] }
 0x464   : > { %v1222_v32 = vmul.f32 %v2135_v31, %v2127_v17  ;;  %1998 = vmatprep.subr.bf16.mxu0 %v2449_v0  ;;  %v1999_v39 = vpack.c.bf16 %v1535_v38, %v1534_v1 }
 0x466   : > { %1964 = vmatmul.mubr.msk.f32.vlgmr.msra.gmra.mrb[12].mxu1 %vm882_vm2, %v1222_v32 }
 0x467   : > { %2000 = vmatpush3.bf16.msra.mxu0 %v1999_v39 }
 0x4c8   : > { %v1292_v33 = vpop.f32.mrb[4].mxu0 }
 0x4c9   : > { %v1950_v34 = vpop.f32.mrb[5].mxu0 }
 0x531   : > { %v1365_v40 = vpop.f32.mrb[10].mxu1 }
 0x532   : > { %1516 = vrot.lane.b32.xlu1 %v1365_v40, %s2455_s6  ;;  %v1955_v41 = vpop.f32.mrb[11].mxu1 }
 0x535   : > { %v1438_v42 = vpop.f32.mrb[6].mxu0 }
 0x536   : > { %1520 = vrot.lane.b32.xlu0 %v1438_v42, %s2456_s19  ;;  %v1960_v43 = vpop.f32.mrb[7].mxu0 }
 0x539   : > { %v1511_v0 = vpop.f32.mrb[12].mxu1 }
 0x53a   : > { %1524 = vrot.lane.b32.xlu1 %v1511_v0, %s2457_s29  ;;  %v1965_v44 = vpop.f32.mrb[13].mxu1 }
 0x5a4   : > { %v1517_v45 = vpop.permute.xlu1 %1516 }
 0x5a5   : > { %v1527_v47 = vsel %vm882_vm2, %v1292_v33, %v1517_v45 }
 0x5a8   : > { %v1521_v46 = vpop.permute.xlu0 %1520 }
 0x5a9   : > { %v1529_v48 = vsel %vm1528_vm3, %v1527_v47, %v1521_v46 }
 0x5ac   : > { %v1525_v49 = vpop.permute.xlu1 %1524 }
 0x5ad   : > { %v1531_v50 = vsel %vm1530_vm4, %v1529_v48, %v1525_v49 }
 0x5ae   : > { %1975 = vmatmul.mubr.msk.f32.vlgmr.msra.gmra.mrb[8].mxu0 %vm614_vm1, %v1531_v50 }
 0x681   : > { %v1605_v53 = vpop.f32.mrb[8].mxu0 }
 0x682   : > { %v1617_v54 = vadd.f32 %v1616_v52, %v1605_v53  ;;  %v1976_v55 = vpop.f32.mrb[9].mxu0 }
 0x684   : > { %1618 = vst.msk [vmem:[%s599_s12] sm:$0xff] %vm614_vm1, %v1617_v54 }
 0x685   : > { %2353 = shalt.err (!%p2350_p7)
}
 0x686   : > { %s2354_s24 = scalar_lea.hbm %s2975_s18, 128  ;;  %s2358_s27 = scalar_lea.hbm %s3108_s9, 256 }
 0x687   : > { %p2355_p10 = scmp.ne.s32.totalorder %s2975_s18, %s2354_s24  ;;  %p2359_p4 = scmp.lt.u32.totalorder %s2975_s18, %s3108_s9 }
 0x688   : > { %p2360_p1 = scmp.lt.u32.totalorder %s2358_s27, %s2354_s24  ;;  %p2362_p13 = scmp.lt.u32.totalorder %s2354_s24, %s2975_s18 }
 0x689   : > { %p2356_p6 = pnand %p2355_p10, %p3109_p12 }
 0x68a   : > { %p2361_p8 = por %p2360_p1, %p2359_p4 }
 0x68b   : > { %p2357_p2 = pneg %p2356_p6 }
 0x68c   : > { %p2363_p3 = por %p2362_p13, %p2361_p8 }
 0x68e   : > { %p2364_p0 = pnand %p2363_p3, %p2357_p2 }
 0x690   : > { %2367 = shalt.err (!%p2364_p0)
}
 0x691   : > { %2021 = dma.vmem_to_hbm [thread:$0]  (%p3109_p12), %s2977_s1, 128, %s2975_s18, %s1620_s13  }
 0x692 PF: > { %s3110_s21 = sld [smem:[#allocation21_spill]]  ;;  %s3111_s16 = sld [smem:[#allocation24_spill]] }
 0x693   : > { %p3113_p9 = scmp.ge.s32.totalorder %s2438_s26, 2 }
 0x698   : > { %s1646_s10 = sand.u32 1, %s3110_s21   ;;  %p3112_p11 = scmp.ne.s32.totalorder %s3111_s16, 0 }
 0x699   : > { %s1647_s12 = scalar_lea.sflag [#allocation4], %s1646_s10 }
 0x69a   : > { %p2047_p5 = pnand %p3113_p9, %p3112_p11 }
 0x69c   : > { %2413 = dma.done.wait (!%p2047_p5), %s1647_s12, 128  }
 0x69d   : > { %2415 = vsyncadd (!%p2047_p5), %s1647_s12, 4294967168  ;;  %s35_s26 = sadd.s32 1, %s2438_s26   ;;  %s3114_s11 = sld [smem:[#allocation27_spill]] }
 0x69e   : > { %p32_p7 = scmp.ge.s32.totalorder %s35_s26, 4   ;;  %s3115_s24 = sld [smem:[#allocation23_spill]] }
 0x69f   : > { %s3116_s25 = sld [smem:[#allocation25_spill]]  ;;  %s3117_s21 = smov %s2422_s22 }
 0x6a0   : > { %s3118_s22 = smov %s2426_s23  ;;  %34 = sbr.rel (!%p32_p7) target bundleno = 20 (0x14), region = 162 }
 0x6a3   : > { %s3119_s23 = smov %s3114_s11 }
 0x6a7   :  { %1652 = vsyncpa [#allocation3], 1 }
 0x6a8   :  { %1654 = vsyncpa [#allocation3 + $0x1], 1 }
 0x6a9   :  { %1655 = vsyncpa [#allocation6], 1 }
 0x6aa   :  { %1657 = vsyncpa [#allocation6 + $0x1], 1 }
 0x6ab   :  { %1658 = vsyncpa [#allocation9], 1 }
 0x6ac   :  { %1660 = vsyncpa [#allocation9 + $0x1], 1 }
 0x6ad   :  { %1661 = vsyncpa [#allocation12], 1 }
 0x6ae   :  { %1662 = vsyncpa [#allocation4], 1 }
 0x6af   :  { %1664 = vsyncpa [#allocation4 + $0x1], 1 }

</bundles_post_ra>
